<compile_context>
chip_gen: v6e
topology: v6e:2x2x1
jax: 0.10.0
libtpu: 0.0.40
codegen_flags: <defaults>
</compile_context>

<pallas_src>
from functools import partial

import jax
import jax.numpy as jnp
from jax import lax
from jax.experimental import pallas as pl
from jax.experimental.pallas import tpu as pltpu


def _round_up(x, k):
    return (x + k - 1) // k * k


_VMEM_CAP_CACHE = []


def _vmem_cap():
    if not _VMEM_CAP_CACHE:
        try:
            _VMEM_CAP_CACHE.append(int(pltpu.get_tpu_info().vmem_capacity_bytes))
        except Exception:
            _VMEM_CAP_CACHE.append(64 * 1024 * 1024)   # conservative (v7x-sized)
    return _VMEM_CAP_CACHE[0]


def _fp_kernel(unknown_ref, known_t_ref, uf_ref, kf_ref,
               w1i_ref, w1u_ref, b1_ref, w2_ref, b2_ref,
               out_ref, *, chunk, n_chunks, idx_bits):
    tile_n = unknown_ref.shape[1]
    c2 = kf_ref.shape[2]
    low_mask = (1 << idx_bits) - 1
    high_mask = ~low_mask                      # negative python int == i32 bit pattern
    int_max = jnp.int32(2 ** 31 - 1)

    u = unknown_ref[0]                         # (tile_n, 3) f32

    # ---- pass 1: streaming 3-NN over m-chunks (packed dist|idx keys) -------
    def topk_chunk(ci, carry):
        k0, k1, k2 = carry
        off = ci * chunk
        if not isinstance(off, int):
            off = pl.multiple_of(off, chunk)
        kt = known_t_ref[0, :, pl.ds(off, chunk)]              # (3, chunk) f32
        # pairwise squared distances on the VPU (no transpose, no MXU)
        d = (u[:, 0:1] - kt[0:1, :]) ** 2
        d = d + (u[:, 1:2] - kt[1:2, :]) ** 2
        d = d + (u[:, 2:3] - kt[2:3, :]) ** 2                  # (tile_n, chunk)
        col = lax.broadcasted_iota(jnp.int32, (tile_n, chunk), 1) + ci * chunk
        # d >= 0 -> bitcast(f32->i32) is order preserving; low bits carry the
        # column index so a single min gives dist + first-occurrence index.
        key = (pltpu.bitcast(d, jnp.int32) & high_mask) | col
        c0 = jnp.min(key, axis=1, keepdims=True)
        key = jnp.where(key == c0, int_max, key)
        c1 = jnp.min(key, axis=1, keepdims=True)
        key = jnp.where(key == c1, int_max, key)
        c2_ = jnp.min(key, axis=1, keepdims=True)
        # merge two sorted triples -> 3 smallest (tiny (tile_n,1) min/max net)
        x0 = jnp.minimum(k0, c0)
        y0 = jnp.maximum(k0, c0)
        x1 = jnp.minimum(k1, c1)
        x2 = jnp.minimum(k2, c2_)
        return x0, jnp.minimum(y0, x1), jnp.minimum(jnp.maximum(y0, x1), x2)

    init = (jnp.full((tile_n, 1), 2 ** 31 - 1, jnp.int32),) * 3
    if n_chunks == 1:
        k0, k1, k2 = topk_chunk(0, init)
    else:
        k0, k1, k2 = lax.fori_loop(0, n_chunks, topk_chunk, init)

    # ---- inverse-distance weights (exact, tiny (tile_n,1) buffers) ---------
    i0 = k0 & low_mask
    i1 = k1 & low_mask
    i2 = k2 & low_mask
    r0 = 1.0 / (pltpu.bitcast(k0 & high_mask, jnp.float32) + 1e-8)
    r1 = 1.0 / (pltpu.bitcast(k1 & high_mask, jnp.float32) + 1e-8)
    r2 = 1.0 / (pltpu.bitcast(k2 & high_mask, jnp.float32) + 1e-8)
    norm = r0 + r1 + r2
    w0 = r0 / norm
    w1 = r1 / norm
    w2 = r2 / norm

    # ---- pass 2: per-chunk 3-hot interpolation on the MXU ------------------
    def interp_chunk(ci, acc):
        off = ci * chunk
        if not isinstance(off, int):
            off = pl.multiple_of(off, chunk)
        col = lax.broadcasted_iota(jnp.int32, (tile_n, chunk), 1) + ci * chunk
        wc = jnp.where(col == i0, w0, 0.0)
        wc = jnp.where(col == i1, w1, wc)
        wc = jnp.where(col == i2, w2, wc)                      # (tile_n, chunk)
        kf = kf_ref[0, pl.ds(off, chunk), :]                   # (chunk, c2) bf16
        return acc + jnp.dot(wc.astype(jnp.bfloat16), kf,
                             preferred_element_type=jnp.float32)

    interp0 = jnp.zeros((tile_n, c2), jnp.float32)
    if n_chunks == 1:
        interp = interp_chunk(0, interp0)
    else:
        interp = lax.fori_loop(0, n_chunks, interp_chunk, interp0)

    # ---- SharedMLP (eval BN folded into weights -> bias + ReLU) ------------
    h = jnp.dot(interp.astype(jnp.bfloat16), w1i_ref[...],
                preferred_element_type=jnp.float32)
    h = h + jnp.dot(uf_ref[0], w1u_ref[...], preferred_element_type=jnp.float32)
    h = jnp.maximum(h + b1_ref[...], 0.0)
    o = jnp.dot(h.astype(jnp.bfloat16), w2_ref[...],
                preferred_element_type=jnp.float32)
    o = jnp.maximum(o + b2_ref[...], 0.0)
    out_ref[0] = o.astype(out_ref.dtype)


@partial(jax.jit, static_argnames=("tile_n", "chunk_m", "vmem_cap"))
def _fp_forward(unknown, known, unknow_feats, known_feats, params, *,
                tile_n, chunk_m, vmem_cap):
    B, n, _ = unknown.shape
    _, m, _ = known.shape
    assert m >= 3, "3-NN interpolation requires at least 3 known points"
    w1, s1, b1, w2, s2, b2 = params
    c1 = unknow_feats.shape[1]
    c2 = known_feats.shape[1]
    hdim = w1.shape[1]
    c_out = w2.shape[1]

    # ---- one-time parameter transforms: fold BN, split w1, pad lane-dense ---
    h_pad = _round_up(hdim, 128)
    c_out_pad = _round_up(c_out, 128)
    w1f = w1 * s1
    w2f = w2 * s2
    w1i = jnp.zeros((c2, h_pad), jnp.float32).at[:, :hdim].set(w1f[:c2]).astype(jnp.bfloat16)
    w1u = jnp.zeros((c1, h_pad), jnp.float32).at[:, :hdim].set(w1f[c2:]).astype(jnp.bfloat16)
    b1p = jnp.zeros((1, h_pad), jnp.float32).at[:, :hdim].set(b1)
    w2p = jnp.zeros((h_pad, c_out_pad), jnp.float32).at[:hdim, :c_out].set(w2f).astype(jnp.bfloat16)
    b2p = jnp.zeros((1, c_out_pad), jnp.float32).at[:, :c_out].set(b2)

    # ---- n tiling (keep the parallel grid >= 2 steps for the v7x megacore) --
    tile_n = max(8, min(tile_n, _round_up(n, 8)))
    if B * ((n + tile_n - 1) // tile_n) < 2 and n > 8:
        tile_n = _round_up((n + 1) // 2, 8)
    n_pad = _round_up(n, tile_n)
    n_tiles = n_pad // tile_n

    # ---- m chunking for the streamed 3-NN / interpolation -------------------
    chunk = _round_up(min(chunk_m, _round_up(m, 128)), 128)
    m_pad = _round_up(m, chunk)
    n_chunks = m_pad // chunk
    idx_bits = max(1, (m_pad - 1).bit_length())

    # ---- layout plumbing (pads are no-ops when shapes already align) --------
    unknown_p = unknown.astype(jnp.float32)
    uf_t = jnp.transpose(unknow_feats, (0, 2, 1)).astype(jnp.bfloat16)   # (B, n, C1)
    if n_pad != n:
        unknown_p = jnp.pad(unknown_p, ((0, 0), (0, n_pad - n), (0, 0)))
        uf_t = jnp.pad(uf_t, ((0, 0), (0, n_pad - n), (0, 0)))
    known_t = jnp.transpose(known, (0, 2, 1)).astype(jnp.float32)        # (B, 3, m)
    kf_t = jnp.transpose(known_feats, (0, 2, 1)).astype(jnp.bfloat16)    # (B, m, C2)
    if m_pad != m:
        # sentinel coordinates -> padded columns never win the 3-NN selection
        known_t = jnp.pad(known_t, ((0, 0), (0, 0), (0, m_pad - m)),
                          constant_values=1e10)
        kf_t = jnp.pad(kf_t, ((0, 0), (0, m_pad - m), (0, 0)))

    # ---- VMEM budget / cost estimate ----------------------------------------
    blk_in = (tile_n * 3 * 4 + 3 * m_pad * 4 + tile_n * c1 * 2 + m_pad * c2 * 2
              + c2 * h_pad * 2 + c1 * h_pad * 2 + h_pad * 4
              + h_pad * c_out_pad * 2 + c_out_pad * 4)
    blk_out = tile_n * c_out_pad * 2
    scratch_est = 4 * tile_n * chunk * 4 + 2 * tile_n * (c2 + h_pad + c_out_pad) * 4
    vmem_limit = int(min(0.85 * vmem_cap,
                         max(32 * 1024 * 1024, 2 * (blk_in + blk_out) + 2 * scratch_est)))
    flops = (2 * B * n_pad * m_pad * (3 + c2)
             + 2 * B * n_pad * ((c1 + c2) * h_pad + h_pad * c_out_pad))
    bytes_accessed = (unknown_p.size * 4 + known_t.size * 4 + uf_t.size * 2
                      + kf_t.size * 2 + B * n_pad * c_out_pad * 2)
    cost = pl.CostEstimate(flops=int(flops), transcendentals=0,
                           bytes_accessed=int(bytes_accessed))

    kernel = partial(_fp_kernel, chunk=chunk, n_chunks=n_chunks, idx_bits=idx_bits)
    out = pl.pallas_call(
        kernel,
        out_shape=jax.ShapeDtypeStruct((B, n_pad, c_out_pad), jnp.bfloat16),
        grid_spec=pltpu.PrefetchScalarGridSpec(
            num_scalar_prefetch=0,
            grid=(B, n_tiles),
            in_specs=[
                pl.BlockSpec((1, tile_n, 3), lambda b, t: (b, t, 0)),      # unknown
                pl.BlockSpec((1, 3, m_pad), lambda b, t: (b, 0, 0)),       # known^T
                pl.BlockSpec((1, tile_n, c1), lambda b, t: (b, t, 0)),     # unknow_feats
                pl.BlockSpec((1, m_pad, c2), lambda b, t: (b, 0, 0)),      # known_feats
                pl.BlockSpec((c2, h_pad), lambda b, t: (0, 0)),            # w1 (interp half)
                pl.BlockSpec((c1, h_pad), lambda b, t: (0, 0)),            # w1 (skip half)
                pl.BlockSpec((1, h_pad), lambda b, t: (0, 0)),             # bias 1
                pl.BlockSpec((h_pad, c_out_pad), lambda b, t: (0, 0)),     # w2
                pl.BlockSpec((1, c_out_pad), lambda b, t: (0, 0)),         # bias 2
            ],
            out_specs=pl.BlockSpec((1, tile_n, c_out_pad), lambda b, t: (b, t, 0)),
        ),
        compiler_params=pltpu.CompilerParams(
            dimension_semantics=("parallel", "parallel"),
            vmem_limit_bytes=vmem_limit),
        cost_estimate=cost,
    )(unknown_p, known_t, uf_t, kf_t, w1i, w1u, b1p, w2p, b2p)

    # drop padding, back to PyTorch layout (B, C_out, n)
    return jnp.transpose(out[:, :n, :c_out].astype(jnp.float32), (0, 2, 1))


def pointnet2_fp(unknown, known, unknow_feats, known_feats, params, *,
                 tile_n=None, chunk_m=512):
    """unknown (B,n,3), known (B,m,3), unknow_feats (B,C1,n), known_feats (B,C2,m)
       -> (B, mlp[-1], n), matching the PyTorch module (eval-mode BN)."""
    if tile_n is None:
        # 512 on 128 MiB-VMEM parts (v5e/v6e), 256 on 64 MiB parts (v7x)
        tile_n = 512 if _vmem_cap() >= 100 * 1024 * 1024 else 256
    return _fp_forward(unknown, known, unknow_feats, known_feats, params,
                       tile_n=tile_n, chunk_m=chunk_m, vmem_cap=_vmem_cap())


def _reference(unknown, known, unknow_feats, known_feats, params):
    """Pure-JAX f32 reference mirroring the PyTorch forward (known is not None)."""
    w1, s1, b1, w2, s2, b2 = params
    d = (jnp.sum(unknown**2, -1)[:, :, None] + jnp.sum(known**2, -1)[:, None, :]
         - 2.0 * jnp.einsum('bnd,bmd->bnm', unknown, known))
    d = jnp.maximum(d, 0.0)
    dist3, idx3 = lax.top_k(-d, 3)
    dist3 = -dist3
    recip = 1.0 / (dist3 + 1e-8)
    weight = recip / jnp.sum(recip, -1, keepdims=True)            # (B, n, 3)
    gathered = jnp.take_along_axis(known_feats[:, :, None, :],
                                   idx3[:, None, :, :], axis=-1)  # (B, C2, n, 3)
    interp = jnp.sum(gathered * weight[:, None, :, :], -1)        # (B, C2, n)
    feats = jnp.concatenate([interp, unknow_feats], axis=1)       # (B, C2+C1, n)
    x = jnp.einsum('bcn,ch->bhn', feats, w1) * s1.T[None] + b1.T[None]
    x = jnp.maximum(x, 0.0)
    x = jnp.einsum('bcn,ch->bhn', x, w2) * s2.T[None] + b2.T[None]
    return jnp.maximum(x, 0.0)


if __name__ == "__main__":
    key = jax.random.PRNGKey(0)
    B, n, m = 2, 16, 8
    C1, C2 = 4, 8
    mlp = [C1 + C2, 32, 16]     # SharedMLP channel spec

    ks = jax.random.split(key, 6)
    unknown = jax.random.normal(ks[0], (B, n, 3), jnp.float32)
    known = jax.random.normal(ks[1], (B, m, 3), jnp.float32)
    unknow_feats = jax.random.normal(ks[2], (B, C1, n), jnp.float32)
    known_feats = jax.random.normal(ks[3], (B, C2, m), jnp.float32)

    # Deterministic parameter init. Conv2d(1x1, bias=False) weights stored as
    # (C_in, C_out); BatchNorm (eval, default init: gamma=1, beta=0, mean=0,
    # var=1) expressed as per-channel scale/shift.
    bn_eps = 1e-5
    w1 = 0.05 * jax.random.normal(ks[4], (mlp[0], mlp[1]), jnp.float32)
    w2 = 0.05 * jax.random.normal(ks[5], (mlp[1], mlp[2]), jnp.float32)
    s1 = jnp.full((1, mlp[1]), 1.0 / jnp.sqrt(1.0 + bn_eps), jnp.float32)
    b1 = jnp.zeros((1, mlp[1]), jnp.float32)
    s2 = jnp.full((1, mlp[2]), 1.0 / jnp.sqrt(1.0 + bn_eps), jnp.float32)
    b2 = jnp.zeros((1, mlp[2]), jnp.float32)
    params = (w1, s1, b1, w2, s2, b2)

    out = pointnet2_fp(unknown, known, unknow_feats, known_feats, params)
    jax.block_until_ready(out)
    assert out.shape == (B, mlp[-1], n), out.shape

    ref = _reference(unknown, known, unknow_feats, known_feats, params)
    # bf16 MXU inputs/output + truncated-distance keys -> bf16-scale tolerance.
    assert jnp.allclose(out, ref, rtol=2e-2, atol=2e-2), \
        float(jnp.max(jnp.abs(out - ref)))

    print("KERNEL_OK")
</pallas_src>

<mosaic_0001>
module attributes {stable_mosaic.version = 11 : i64} {
  func.func @_fp_kernel(%arg0: i32, %arg1: i32, %arg2: memref<1x16x3xf32, #tpu.memory_space<vmem>>, %arg3: memref<1x3x128xf32, #tpu.memory_space<vmem>>, %arg4: memref<1x16x4xbf16, #tpu.memory_space<vmem>>, %arg5: memref<1x128x8xbf16, #tpu.memory_space<vmem>>, %arg6: memref<8x128xbf16, #tpu.memory_space<vmem>>, %arg7: memref<4x128xbf16, #tpu.memory_space<vmem>>, %arg8: memref<1x128xf32, #tpu.memory_space<vmem>>, %arg9: memref<128x128xbf16, #tpu.memory_space<vmem>>, %arg10: memref<1x128xf32, #tpu.memory_space<vmem>>, %arg11: memref<1x16x128xbf16, #tpu.memory_space<vmem>>) attributes {dimension_semantics = [#tpu.dimension_semantics<parallel>, #tpu.dimension_semantics<parallel>], iteration_bounds = array<i64: 2, 1>, scalar_prefetch = 0 : i64, scratch_operands = 0 : i64, tpu.core_type = #tpu.core_type<tc>, window_params = [{transform_indices = @transform_0, window_bounds = array<i64: 1, 16, 3>}, {transform_indices = @transform_1, window_bounds = array<i64: 1, 3, 128>}, {transform_indices = @transform_2, window_bounds = array<i64: 1, 16, 4>}, {transform_indices = @transform_3, window_bounds = array<i64: 1, 128, 8>}, {pipeline_mode = #tpu.pipeline_mode<synchronous>, transform_indices = @transform_4, window_bounds = array<i64: 8, 128>}, {pipeline_mode = #tpu.pipeline_mode<synchronous>, transform_indices = @transform_5, window_bounds = array<i64: 4, 128>}, {pipeline_mode = #tpu.pipeline_mode<synchronous>, transform_indices = @transform_6, window_bounds = array<i64: 1, 128>}, {pipeline_mode = #tpu.pipeline_mode<synchronous>, transform_indices = @transform_7, window_bounds = array<i64: 128, 128>}, {pipeline_mode = #tpu.pipeline_mode<synchronous>, transform_indices = @transform_8, window_bounds = array<i64: 1, 128>}, {transform_indices = @transform_9, window_bounds = array<i64: 1, 16, 128>}]} {
    %c0 = arith.constant 0 : index
    %c0_0 = arith.constant 0 : index
    %c0_1 = arith.constant 0 : index
    %0 = vector.load %arg2[%c0, %c0_0, %c0_1] : memref<1x16x3xf32, #tpu.memory_space<vmem>>, vector<1x16x3xf32>
    %1 = vector.shape_cast %0 : vector<1x16x3xf32> to vector<16x3xf32>
    %c2147483647_i32 = arith.constant 2147483647 : i32
    %2 = vector.broadcast %c2147483647_i32 : i32 to vector<16x1xi32>
    %c0_2 = arith.constant 0 : index
    %c0_3 = arith.constant 0 : index
    %c0_4 = arith.constant 0 : index
    %3 = vector.load %arg3[%c0_2, %c0_3, %c0_4] : memref<1x3x128xf32, #tpu.memory_space<vmem>>, vector<1x3x128xf32>
    %4 = vector.shape_cast %3 : vector<1x3x128xf32> to vector<3x128xf32>
    %5 = vector.extract_strided_slice %1 {offsets = [0, 0], sizes = [16, 1], strides = [1, 1]} : vector<16x3xf32> to vector<16x1xf32>
    %6 = vector.extract_strided_slice %4 {offsets = [0, 0], sizes = [1, 128], strides = [1, 1]} : vector<3x128xf32> to vector<1x128xf32>
    %7 = vector.broadcast %5 : vector<16x1xf32> to vector<16x128xf32>
    %8 = vector.broadcast %6 : vector<1x128xf32> to vector<16x128xf32>
    %9 = arith.subf %7, %8 : vector<16x128xf32>
    %10 = arith.mulf %9, %9 : vector<16x128xf32>
    %11 = vector.extract_strided_slice %1 {offsets = [0, 1], sizes = [16, 1], strides = [1, 1]} : vector<16x3xf32> to vector<16x1xf32>
    %12 = vector.extract_strided_slice %4 {offsets = [1, 0], sizes = [1, 128], strides = [1, 1]} : vector<3x128xf32> to vector<1x128xf32>
    %13 = vector.broadcast %11 : vector<16x1xf32> to vector<16x128xf32>
    %14 = vector.broadcast %12 : vector<1x128xf32> to vector<16x128xf32>
    %15 = arith.subf %13, %14 : vector<16x128xf32>
    %16 = arith.mulf %15, %15 : vector<16x128xf32>
    %17 = arith.addf %10, %16 : vector<16x128xf32>
    %18 = vector.extract_strided_slice %1 {offsets = [0, 2], sizes = [16, 1], strides = [1, 1]} : vector<16x3xf32> to vector<16x1xf32>
    %19 = vector.extract_strided_slice %4 {offsets = [2, 0], sizes = [1, 128], strides = [1, 1]} : vector<3x128xf32> to vector<1x128xf32>
    %20 = vector.broadcast %18 : vector<16x1xf32> to vector<16x128xf32>
    %21 = vector.broadcast %19 : vector<1x128xf32> to vector<16x128xf32>
    %22 = arith.subf %20, %21 : vector<16x128xf32>
    %23 = arith.mulf %22, %22 : vector<16x128xf32>
    %24 = arith.addf %17, %23 : vector<16x128xf32>
    %25 = tpu.iota {dimensions = array<i32: 1>} : vector<16x128xi32>
    %c0_i32 = arith.constant 0 : i32
    %26 = vector.broadcast %c0_i32 : i32 to vector<16x128xi32>
    %27 = arith.addi %25, %26 : vector<16x128xi32>
    %28 = tpu.bitcast %24 : vector<16x128xf32> -> vector<16x128xi32>
    %c-128_i32 = arith.constant -128 : i32
    %29 = vector.broadcast %c-128_i32 : i32 to vector<16x128xi32>
    %30 = arith.andi %28, %29 : vector<16x128xi32>
    %31 = arith.ori %30, %27 : vector<16x128xi32>
    %cst = arith.constant dense<2147483647> : vector<16xi32>
    %32 = vector.multi_reduction <minsi>, %31, %cst [1] : vector<16x128xi32> to vector<16xi32>
    %33 = vector.shape_cast %32 : vector<16xi32> to vector<16x1xi32>
    %34 = vector.broadcast %33 : vector<16x1xi32> to vector<16x128xi32>
    %35 = arith.cmpi eq, %31, %34 : vector<16x128xi32>
    %c2147483647_i32_5 = arith.constant 2147483647 : i32
    %36 = vector.broadcast %c2147483647_i32_5 : i32 to vector<16x128xi32>
    %37 = arith.select %35, %36, %31 : vector<16x128xi1>, vector<16x128xi32>
    %cst_6 = arith.constant dense<2147483647> : vector<16xi32>
    %38 = vector.multi_reduction <minsi>, %37, %cst_6 [1] : vector<16x128xi32> to vector<16xi32>
    %39 = vector.shape_cast %38 : vector<16xi32> to vector<16x1xi32>
    %40 = vector.broadcast %39 : vector<16x1xi32> to vector<16x128xi32>
    %41 = arith.cmpi eq, %37, %40 : vector<16x128xi32>
    %c2147483647_i32_7 = arith.constant 2147483647 : i32
    %42 = vector.broadcast %c2147483647_i32_7 : i32 to vector<16x128xi32>
    %43 = arith.select %41, %42, %37 : vector<16x128xi1>, vector<16x128xi32>
    %cst_8 = arith.constant dense<2147483647> : vector<16xi32>
    %44 = vector.multi_reduction <minsi>, %43, %cst_8 [1] : vector<16x128xi32> to vector<16xi32>
    %45 = vector.shape_cast %44 : vector<16xi32> to vector<16x1xi32>
    %46 = arith.minsi %2, %33 : vector<16x1xi32>
    %47 = arith.maxsi %2, %33 : vector<16x1xi32>
    %48 = arith.minsi %2, %39 : vector<16x1xi32>
    %49 = arith.minsi %2, %45 : vector<16x1xi32>
    %50 = arith.minsi %47, %48 : vector<16x1xi32>
    %51 = arith.maxsi %47, %48 : vector<16x1xi32>
    %52 = arith.minsi %51, %49 : vector<16x1xi32>
    %c127_i32 = arith.constant 127 : i32
    %53 = vector.broadcast %c127_i32 : i32 to vector<16x1xi32>
    %54 = arith.andi %46, %53 : vector<16x1xi32>
    %c127_i32_9 = arith.constant 127 : i32
    %55 = vector.broadcast %c127_i32_9 : i32 to vector<16x1xi32>
    %56 = arith.andi %50, %55 : vector<16x1xi32>
    %c127_i32_10 = arith.constant 127 : i32
    %57 = vector.broadcast %c127_i32_10 : i32 to vector<16x1xi32>
    %58 = arith.andi %52, %57 : vector<16x1xi32>
    %c-128_i32_11 = arith.constant -128 : i32
    %59 = vector.broadcast %c-128_i32_11 : i32 to vector<16x1xi32>
    %60 = arith.andi %46, %59 : vector<16x1xi32>
    %61 = tpu.bitcast %60 : vector<16x1xi32> -> vector<16x1xf32>
    %cst_12 = arith.constant 9.99999993E-9 : f32
    %62 = vector.broadcast %cst_12 : f32 to vector<16x1xf32>
    %63 = arith.addf %61, %62 : vector<16x1xf32>
    %cst_13 = arith.constant 1.000000e+00 : f32
    %64 = vector.broadcast %cst_13 : f32 to vector<16x1xf32>
    %65 = arith.divf %64, %63 : vector<16x1xf32>
    %c-128_i32_14 = arith.constant -128 : i32
    %66 = vector.broadcast %c-128_i32_14 : i32 to vector<16x1xi32>
    %67 = arith.andi %50, %66 : vector<16x1xi32>
    %68 = tpu.bitcast %67 : vector<16x1xi32> -> vector<16x1xf32>
    %cst_15 = arith.constant 9.99999993E-9 : f32
    %69 = vector.broadcast %cst_15 : f32 to vector<16x1xf32>
    %70 = arith.addf %68, %69 : vector<16x1xf32>
    %cst_16 = arith.constant 1.000000e+00 : f32
    %71 = vector.broadcast %cst_16 : f32 to vector<16x1xf32>
    %72 = arith.divf %71, %70 : vector<16x1xf32>
    %c-128_i32_17 = arith.constant -128 : i32
    %73 = vector.broadcast %c-128_i32_17 : i32 to vector<16x1xi32>
    %74 = arith.andi %52, %73 : vector<16x1xi32>
    %75 = tpu.bitcast %74 : vector<16x1xi32> -> vector<16x1xf32>
    %cst_18 = arith.constant 9.99999993E-9 : f32
    %76 = vector.broadcast %cst_18 : f32 to vector<16x1xf32>
    %77 = arith.addf %75, %76 : vector<16x1xf32>
    %cst_19 = arith.constant 1.000000e+00 : f32
    %78 = vector.broadcast %cst_19 : f32 to vector<16x1xf32>
    %79 = arith.divf %78, %77 : vector<16x1xf32>
    %80 = arith.addf %65, %72 : vector<16x1xf32>
    %81 = arith.addf %80, %79 : vector<16x1xf32>
    %82 = arith.divf %65, %81 : vector<16x1xf32>
    %83 = arith.divf %72, %81 : vector<16x1xf32>
    %84 = arith.divf %79, %81 : vector<16x1xf32>
    %cst_20 = arith.constant 0.000000e+00 : f32
    %85 = vector.broadcast %cst_20 : f32 to vector<16x8xf32>
    %86 = tpu.iota {dimensions = array<i32: 1>} : vector<16x128xi32>
    %c0_i32_21 = arith.constant 0 : i32
    %87 = vector.broadcast %c0_i32_21 : i32 to vector<16x128xi32>
    %88 = arith.addi %86, %87 : vector<16x128xi32>
    %89 = vector.broadcast %54 : vector<16x1xi32> to vector<16x128xi32>
    %90 = arith.cmpi eq, %88, %89 : vector<16x128xi32>
    %cst_22 = arith.constant 0.000000e+00 : f32
    %91 = vector.shape_cast %82 : vector<16x1xf32> to vector<16x1xf32>
    %92 = vector.broadcast %91 : vector<16x1xf32> to vector<16x128xf32>
    %93 = vector.broadcast %cst_22 : f32 to vector<16x128xf32>
    %94 = arith.select %90, %92, %93 : vector<16x128xi1>, vector<16x128xf32>
    %95 = vector.broadcast %56 : vector<16x1xi32> to vector<16x128xi32>
    %96 = arith.cmpi eq, %88, %95 : vector<16x128xi32>
    %97 = vector.shape_cast %83 : vector<16x1xf32> to vector<16x1xf32>
    %98 = vector.broadcast %97 : vector<16x1xf32> to vector<16x128xf32>
    %99 = arith.select %96, %98, %94 : vector<16x128xi1>, vector<16x128xf32>
    %100 = vector.broadcast %58 : vector<16x1xi32> to vector<16x128xi32>
    %101 = arith.cmpi eq, %88, %100 : vector<16x128xi32>
    %102 = vector.shape_cast %84 : vector<16x1xf32> to vector<16x1xf32>
    %103 = vector.broadcast %102 : vector<16x1xf32> to vector<16x128xf32>
    %104 = arith.select %101, %103, %99 : vector<16x128xi1>, vector<16x128xf32>
    %c0_23 = arith.constant 0 : index
    %c0_24 = arith.constant 0 : index
    %c0_25 = arith.constant 0 : index
    %105 = vector.load %arg5[%c0_23, %c0_24, %c0_25] : memref<1x128x8xbf16, #tpu.memory_space<vmem>>, vector<1x128x8xbf16>
    %106 = vector.shape_cast %105 : vector<1x128x8xbf16> to vector<128x8xbf16>
    %107 = arith.truncf %104 : vector<16x128xf32> to vector<16x128xbf16>
    %cst_26 = arith.constant dense<0.000000e+00> : vector<16x8xf32>
    %108 = tpu.matmul %107, %106, %cst_26 {dimension_numbers = #tpu.dot_dimension_numbers<[1], [0], [0], [1], [0, 0, 1, 1], [], []>} : vector<16x128xbf16>, vector<128x8xbf16>, vector<16x8xf32> -> vector<16x8xf32>
    %109 = arith.addf %85, %108 : vector<16x8xf32>
    %110 = arith.truncf %109 : vector<16x8xf32> to vector<16x8xbf16>
    %c0_27 = arith.constant 0 : index
    %c0_28 = arith.constant 0 : index
    %111 = vector.load %arg6[%c0_27, %c0_28] : memref<8x128xbf16, #tpu.memory_space<vmem>>, vector<8x128xbf16>
    %cst_29 = arith.constant dense<0.000000e+00> : vector<16x128xf32>
    %112 = tpu.matmul %110, %111, %cst_29 {dimension_numbers = #tpu.dot_dimension_numbers<[1], [0], [0], [1], [0, 0, 1, 1], [], []>} : vector<16x8xbf16>, vector<8x128xbf16>, vector<16x128xf32> -> vector<16x128xf32>
    %c0_30 = arith.constant 0 : index
    %c0_31 = arith.constant 0 : index
    %c0_32 = arith.constant 0 : index
    %113 = vector.load %arg4[%c0_30, %c0_31, %c0_32] : memref<1x16x4xbf16, #tpu.memory_space<vmem>>, vector<1x16x4xbf16>
    %114 = vector.shape_cast %113 : vector<1x16x4xbf16> to vector<16x4xbf16>
    %c0_33 = arith.constant 0 : index
    %c0_34 = arith.constant 0 : index
    %115 = vector.load %arg7[%c0_33, %c0_34] : memref<4x128xbf16, #tpu.memory_space<vmem>>, vector<4x128xbf16>
    %cst_35 = arith.constant dense<0.000000e+00> : vector<16x128xf32>
    %116 = tpu.matmul %114, %115, %cst_35 {dimension_numbers = #tpu.dot_dimension_numbers<[1], [0], [0], [1], [0, 0, 1, 1], [], []>} : vector<16x4xbf16>, vector<4x128xbf16>, vector<16x128xf32> -> vector<16x128xf32>
    %117 = arith.addf %112, %116 : vector<16x128xf32>
    %c0_36 = arith.constant 0 : index
    %c0_37 = arith.constant 0 : index
    %118 = vector.load %arg8[%c0_36, %c0_37] : memref<1x128xf32, #tpu.memory_space<vmem>>, vector<1x128xf32>
    %119 = vector.broadcast %118 : vector<1x128xf32> to vector<16x128xf32>
    %120 = arith.addf %117, %119 : vector<16x128xf32>
    %cst_38 = arith.constant 0.000000e+00 : f32
    %121 = vector.broadcast %cst_38 : f32 to vector<16x128xf32>
    %122 = arith.maximumf %120, %121 : vector<16x128xf32>
    %123 = arith.truncf %122 : vector<16x128xf32> to vector<16x128xbf16>
    %c0_39 = arith.constant 0 : index
    %c0_40 = arith.constant 0 : index
    %124 = vector.load %arg9[%c0_39, %c0_40] : memref<128x128xbf16, #tpu.memory_space<vmem>>, vector<128x128xbf16>
    %cst_41 = arith.constant dense<0.000000e+00> : vector<16x128xf32>
    %125 = tpu.matmul %123, %124, %cst_41 {dimension_numbers = #tpu.dot_dimension_numbers<[1], [0], [0], [1], [0, 0, 1, 1], [], []>} : vector<16x128xbf16>, vector<128x128xbf16>, vector<16x128xf32> -> vector<16x128xf32>
    %c0_42 = arith.constant 0 : index
    %c0_43 = arith.constant 0 : index
    %126 = vector.load %arg10[%c0_42, %c0_43] : memref<1x128xf32, #tpu.memory_space<vmem>>, vector<1x128xf32>
    %127 = vector.broadcast %126 : vector<1x128xf32> to vector<16x128xf32>
    %128 = arith.addf %125, %127 : vector<16x128xf32>
    %cst_44 = arith.constant 0.000000e+00 : f32
    %129 = vector.broadcast %cst_44 : f32 to vector<16x128xf32>
    %130 = arith.maximumf %128, %129 : vector<16x128xf32>
    %131 = arith.truncf %130 : vector<16x128xf32> to vector<16x128xbf16>
    %c0_45 = arith.constant 0 : index
    %c0_46 = arith.constant 0 : index
    %c0_47 = arith.constant 0 : index
    %132 = vector.load %arg11[%c0_45, %c0_46, %c0_47] : memref<1x16x128xbf16, #tpu.memory_space<vmem>>, vector<1x16x128xbf16>
    %133 = vector.shape_cast %132 : vector<1x16x128xbf16> to vector<16x128xbf16>
    %134 = vector.shape_cast %131 : vector<16x128xbf16> to vector<1x16x128xbf16>
    tpu.vector_store %arg11[%c0_45, %c0_46, %c0_47], %134 {strides = array<i32>} : memref<1x16x128xbf16, #tpu.memory_space<vmem>>, vector<1x16x128xbf16>,
    return
  }
  func.func @transform_0(%arg0: i32, %arg1: i32) -> (i32, i32, i32) {
    %c0_i32 = arith.constant 0 : i32
    %c0_i32_0 = arith.constant 0 : i32
    return %arg0, %arg1, %c0_i32 : i32, i32, i32
  }
  func.func @transform_1(%arg0: i32, %arg1: i32) -> (i32, i32, i32) {
    %c0_i32 = arith.constant 0 : i32
    %c0_i32_0 = arith.constant 0 : i32
    %c0_i32_1 = arith.constant 0 : i32
    return %arg0, %c0_i32, %c0_i32_0 : i32, i32, i32
  }
  func.func @transform_2(%arg0: i32, %arg1: i32) -> (i32, i32, i32) {
    %c0_i32 = arith.constant 0 : i32
    %c0_i32_0 = arith.constant 0 : i32
    return %arg0, %arg1, %c0_i32 : i32, i32, i32
  }
  func.func @transform_3(%arg0: i32, %arg1: i32) -> (i32, i32, i32) {
    %c0_i32 = arith.constant 0 : i32
    %c0_i32_0 = arith.constant 0 : i32
    %c0_i32_1 = arith.constant 0 : i32
    return %arg0, %c0_i32, %c0_i32_0 : i32, i32, i32
  }
  func.func @transform_4(%arg0: i32, %arg1: i32) -> (i32, i32) {
    %c0_i32 = arith.constant 0 : i32
    %c0_i32_0 = arith.constant 0 : i32
    %c0_i32_1 = arith.constant 0 : i32
    return %c0_i32, %c0_i32_0 : i32, i32
  }
  func.func @transform_5(%arg0: i32, %arg1: i32) -> (i32, i32) {
    %c0_i32 = arith.constant 0 : i32
    %c0_i32_0 = arith.constant 0 : i32
    %c0_i32_1 = arith.constant 0 : i32
    return %c0_i32, %c0_i32_0 : i32, i32
  }
  func.func @transform_6(%arg0: i32, %arg1: i32) -> (i32, i32) {
    %c0_i32 = arith.constant 0 : i32
    %c0_i32_0 = arith.constant 0 : i32
    %c0_i32_1 = arith.constant 0 : i32
    return %c0_i32, %c0_i32_0 : i32, i32
  }
  func.func @transform_7(%arg0: i32, %arg1: i32) -> (i32, i32) {
    %c0_i32 = arith.constant 0 : i32
    %c0_i32_0 = arith.constant 0 : i32
    %c0_i32_1 = arith.constant 0 : i32
    return %c0_i32, %c0_i32_0 : i32, i32
  }
  func.func @transform_8(%arg0: i32, %arg1: i32) -> (i32, i32) {
    %c0_i32 = arith.constant 0 : i32
    %c0_i32_0 = arith.constant 0 : i32
    %c0_i32_1 = arith.constant 0 : i32
    return %c0_i32, %c0_i32_0 : i32, i32
  }
  func.func @transform_9(%arg0: i32, %arg1: i32) -> (i32, i32, i32) {
    %c0_i32 = arith.constant 0 : i32
    %c0_i32_0 = arith.constant 0 : i32
    return %arg0, %arg1, %c0_i32 : i32, i32, i32
  }
}

</mosaic_0001>

<bundles_post_ra>
// kernel: _fp_forward.1
= control target key start
LH: loop header
LB: loop body
LE: loop exit
PB: predicated region body
PF: predicated region fallthrough
CT: control target
= control target key end

     0   :  { %s1411_s30 = smov 0   ;;  %s1413_s10 = smov 0   ;;  %s1587_s0 = inlined_call_operand.vmem [shape: f32[2,16,3], index: 0, kind: input, shape index: {}]   ;;  %s1588_s1 = inlined_call_operand.vmem [shape: f32[2,3,128], index: 1, kind: input, shape index: {}]   ;;  %s1589_s2 = inlined_call_operand.vmem [shape: bf16[2,16,4], index: 2, kind: input, shape index: {}]   ;;  %s1590_s3 = inlined_call_operand.vmem [shape: bf16[2,128,8], index: 3, kind: input, shape index: {}]   ;;  %s1591_s4 = inlined_call_operand.vmem [shape: bf16[8,128], index: 4, kind: input, shape index: {}]   ;;  %s1592_s5 = inlined_call_operand.vmem [shape: bf16[4,128], index: 5, kind: input, shape index: {}]   ;;  %s1593_s6 = inlined_call_operand.vmem [shape: f32[1,128], index: 6, kind: input, shape index: {}]   ;;  %s1594_s7 = inlined_call_operand.vmem [shape: bf16[128,128], index: 7, kind: input, shape index: {}]   ;;  %s1595_s8 = inlined_call_operand.vmem [shape: f32[1,128], index: 8, kind: input, shape index: {}]   ;;  %s1596_s9 = inlined_call_operand.vmem [shape: bf16[2,16,128], index: 9, kind: output, shape index: {}]  }
   0x1   :  { %s1415_s11 = smov 0  }
   0x2 LB: > { %s31_s12 = sadd.s32 1, %s1350_s10  ;;  %p1146_p0 = scmp.ge.s32.totalorder %s1354_s11, 1  ;;  %s1354_s11 = sphi %s1415_s11, %s19_s11   ;;  %s1350_s10 = sphi %s1413_s10, %s1600_s10   ;;  %s1346_s30 = sphi %s1411_s30, %s1599_s30  }
   0x3   : > { %p33_p1 = scmp.ge.s32.totalorder %s31_s12, 2  ;;  %p344_p2 = scmp.lt.s32.totalorder %s1354_s11, 3 }
   0x5   : > { %s1602_s12 = smov (%p33_p1, %s31_s12), 0  ;;  %p345_p3 = pnand %p1146_p0, %p344_p2 }
   0x6   : > { %p407_p4 = scmp.lt.s32.totalorder (!%p345_p3), %s1346_s30, 1 }
   0x7   : > { %348 = sbr.rel (%p345_p3) target bundleno = 1671 (0x687), region = 56 }
   0xc   : > { %v1356_v0 = vmov 1   ;;  %v1357_v1 = vmov 0   ;;  %s1604_s30 = smov (!%p407_p4, %s1346_s30), 1  ;;  %v1358_v4 = vmov 2   ;;  %v459_v5 = vlaneseq }
   0xd   : > { %1296 = vset.pattern.permute.xlu1 %v1356_v0  ;;  %1295 = vset.pattern.permute.xlu0 %v1357_v1  ;;  %s1181_s13 = sshll.u32 %s1604_s30, 4  ;;  %s1183_s14 = sshll.u32 %s1604_s30, 6  ;;  %vm1360_vm10 = vmmov 0   ;;  %vm783_vm15 = vcmask 1041408  }
   0xe   : > { %s414_s17 = scalar_lea.vmem %s1587_s0, %s1181_s13  ;;  %s1439_s20 = scalar_lea.vmem %s1590_s3, %s1183_s14  ;;  %v460_v6 = vshrl.u32 %v459_v5, 7  ;;  %v1445_v34 = vand.u32 127, %v459_v5 }
   0xf   : > { %v446_v2 = vld [vmem:[%s414_s17] sm:$0xff]  ;;  %v447_v3 = vld [vmem:[%s414_s17 + $0x8] sm:$0xff]  ;;  %s1149_s21 = sshll.u32 %s1604_s30, 2  ;;  %s1182_s27 = sshll.u32 %s1604_s30, 3 }
  0x10   : > { %468 = vperm.xlu1 %1296, %v446_v2   ;;  %451 = vperm.xlu0 %1295, %v446_v2   ;;  %s419_s24 = scalar_lea.vmem %s1588_s1, %s1149_s21  ;;  %v477_v7 = vsub.s32 1, %v460_v6  ;;  %v461_v8 = vsub.s32 0, %v460_v6  ;;  %v495_v14 = vsub.s32 2, %v460_v6  ;;  %s428_s13 = scalar_lea.vmem %s1589_s2, %s1182_s27 }
  0x11   : > { %v448_v9 = vld [vmem:[%s419_s24] sm:$0x7]  ;;  %s443_s22 = scalar_lea.vmem %s1596_s9, %s1182_s27 }
  0x12   : > { %v478_v10 = vrot.slane %v448_v9, %v477_v7  ;;  %v462_v12 = vrot.slane %v448_v9, %v461_v8  ;;  %v496_v21 = vrot.slane %v448_v9, %v495_v14 }
  0x14   : > { %472 = vperm.xlu1 %1296, %v447_v3   ;;  %456 = vperm.xlu0 %1295, %v447_v3  }
  0x18   : > { %1298 = vset.pattern.permute.xlu1 %v1358_v4  ;;  %1297 = vset.pattern.permute.xlu0 %v1358_v4 }
  0x19   : > { %490 = vperm.xlu1 %1298, %v447_v3   ;;  %486 = vperm.xlu0 %1297, %v446_v2  }
  0x8b   : > { %v469_v11 = vpop.permute.xlu1 %468  ;;  %v452_v13 = vpop.permute.xlu0 %451 }
  0x8c   : > { %v479_v15 = vsub.f32 %v469_v11, %v478_v10  ;;  %v463_v16 = vsub.f32 %v452_v13, %v462_v12 }
  0x8e   : > { %v481_v22 = vmul.f32 %v479_v15, %v479_v15  ;;  %v465_v23 = vmul.f32 %v463_v16, %v463_v16 }
  0x8f   : > { %v473_v17 = vpop.permute.xlu1 %472  ;;  %v457_v18 = vpop.permute.xlu0 %456 }
  0x90   : > { %v480_v19 = vsub.f32 %v473_v17, %v478_v10  ;;  %v464_v20 = vsub.f32 %v457_v18, %v462_v12  ;;  %v483_v30 = vadd.f32 %v481_v22, %v465_v23 }
  0x92   : > { %v482_v24 = vmul.f32 %v480_v19, %v480_v19  ;;  %v466_v25 = vmul.f32 %v464_v20, %v464_v20 }
  0x94   : > { %v491_v26 = vpop.permute.xlu1 %490  ;;  %v487_v27 = vpop.permute.xlu0 %486  ;;  %v484_v31 = vadd.f32 %v482_v24, %v466_v25 }
  0x95   : > { %v498_v28 = vsub.f32 %v491_v26, %v496_v21  ;;  %v497_v29 = vsub.f32 %v487_v27, %v496_v21 }
  0x97   : > { %v500_v32 = vmul.f32 %v498_v28, %v498_v28  ;;  %v499_v33 = vmul.f32 %v497_v29, %v497_v29 }
  0x99   : > { %v502_v35 = vadd.f32 %v500_v32, %v484_v31  ;;  %v501_v36 = vadd.f32 %v499_v33, %v483_v30 }
  0x9b   : > { %v508_v37 = vand.u32 4294967168, %v502_v35  ;;  %v507_v38 = vand.u32 4294967168, %v501_v36 }
  0x9d   : > { %v510_v39 = vor.u32 %v508_v37, %v1445_v34  ;;  %v509_v40 = vor.u32 %v507_v38, %v1445_v34 }
  0x9f   : > { %v526_v41 = vshra.s32 %v510_v39, 16  ;;  %v512_v42 = vshra.s32 %v509_v40, 16  ;;  %v511_v45 = vand.u32 65535, %v509_v40  ;;  %v525_v46 = vand.u32 65535, %v510_v39 }
  0xa1   : > { %v528_v43 = vcvt.s32.f32 %v526_v41  ;;  %v514_v44 = vcvt.s32.f32 %v512_v42  ;;  %v513_v49 = vcvt.s32.f32 %v511_v45  ;;  %v527_v50 = vcvt.s32.f32 %v525_v46 }
  0xa3   : > { %529 = vmin.xlane.f32.xlu0 %v528_v43  ;;  %515 = vmin.xlane.f32.xlu1 %v514_v44 }
 0x12c   : > { %v516_v47 = vpop.xlane.xlu1 %515  ;;  %v530_v48 = vpop.xlane.xlu0 %529 }
 0x12d   : > { %vm517_vm0 = vcmp.eq.f32.partialorder %v514_v44, %v516_v47  ;;  %vm531_vm1 = vcmp.eq.f32.partialorder %v528_v43, %v530_v48  ;;  %v522_v53 = vcvt.f32.s32 %v516_v47  ;;  %v536_v54 = vcvt.f32.s32 %v530_v48 }
 0x12e   : > { %v518_v51 = vsel %vm517_vm0, %v513_v49, inf  ;;  %v532_v52 = vsel %vm531_vm1, %v527_v50, inf }
 0x12f   : > { %519 = vmin.xlane.f32.xlu0 %v518_v51  ;;  %533 = vmin.xlane.f32.xlu1 %v532_v52  ;;  %v523_v57 = vshll.u32 %v522_v53, 16  ;;  %v537_v58 = vshll.u32 %v536_v54, 16  ;;  %v1299_v52 = vld [vmem:[%s1439_s20 + $0x38] sm:$0xff]   ;;  %v1359_v53 = vmov 0.0   ;;  %v1300_v54 = vld [vmem:[%s1439_s20 + $0x30] sm:$0xff]  }
 0x130   : > { %1214 = vmatprep.subr.bf16.mxu0 %v1359_v53  ;;  %1240 = vmatprep.subr.bf16.mxu1 %v1359_v53 }
 0x131   : > { %1215 = vmatpush3.bf16.msra.mxu0 %v1299_v52  ;;  %1230 = vmatprep.mubr.msk.bf16.mxu0 %vm1360_vm10, %v1359_v53 }
 0x132   : > { %1216 = vmatprep.subr.bf16.mxu0 %v1359_v53  ;;  %1242 = vmatprep.mubr.msk.bf16.mxu1 %vm1360_vm10, %v1359_v53 }
 0x135   : > { %1217 = vmatpush3.bf16.msra.mxu0 %v1300_v54 }
 0x136   : > { %1218 = vmatprep.subr.bf16.mxu0 %v1359_v53 }
 0x1b8   : > { %v534_v55 = vpop.xlane.xlu1 %533  ;;  %v520_v56 = vpop.xlane.xlu0 %519 }
 0x1b9   : > { %v535_v59 = vcvt.f32.s32 %v534_v55  ;;  %v521_v60 = vcvt.f32.s32 %v520_v56  ;;  %v1301_v55 = vld [vmem:[%s1439_s20 + $0x28] sm:$0xff]   ;;  %v1302_v56 = vld [vmem:[%s1439_s20 + $0x20] sm:$0xff]  }
 0x1ba   : > { %1219 = vmatpush3.bf16.msra.mxu0 %v1301_v55 }
 0x1bb   : > { %v1449_v61 = vadd.s32 %v537_v58, %v535_v59  ;;  %v1451_v62 = vadd.s32 %v523_v57, %v521_v60  ;;  %1220 = vmatprep.subr.bf16.mxu0 %v1359_v53  ;;  %v1303_v57 = vld [vmem:[%s1439_s20 + $0x18] sm:$0xff]   ;;  %v1304_v58 = vld [vmem:[%s1439_s20 + $0x10] sm:$0xff]   ;;  %v1305_v59 = vld [vmem:[%s1439_s20 + $0x8] sm:$0xff]  }
 0x1bc   : > { %v1306_v60 = vld [vmem:[%s1439_s20] sm:$0xff]  }
 0x1bd   : > { %vm540_vm2 = vcmp.eq.s32.totalorder %v510_v39, %v1449_v61  ;;  %vm539_vm3 = vcmp.eq.s32.totalorder %v509_v40, %v1451_v62  ;;  %v610_v15 = vand.u32 4294967168, %v1449_v61  ;;  %v609_v16 = vand.u32 4294967168, %v1451_v62 }
 0x1be   : > { %v542_v63 = vsel %vm540_vm2, 2147483647, %v510_v39  ;;  %v541_v0 = vsel %vm539_vm3, 2147483647, %v509_v40  ;;  %1221 = vmatpush3.bf16.msra.mxu0 %v1302_v56  ;;  %vm779_vm2 = vcmask 31744   ;;  %vm832_vm3 = vcmask 1043456  }
 0x1bf   : > { %v558_v1 = vshra.s32 %v542_v63, 16  ;;  %v544_v2 = vshra.s32 %v541_v0, 16  ;;  %v557_v5 = vand.u32 65535, %v542_v63  ;;  %v543_v6 = vand.u32 65535, %v541_v0  ;;  %1222 = vmatprep.subr.bf16.mxu0 %v1359_v53 }
 0x1c0   : > { %v614_v23 = vadd.f32 1e-08, %v610_v15  ;;  %v613_v26 = vadd.f32 1e-08, %v609_v16 }
 0x1c1   : > { %v560_v3 = vcvt.s32.f32 %v558_v1  ;;  %v546_v4 = vcvt.s32.f32 %v544_v2  ;;  %v559_v9 = vcvt.s32.f32 %v557_v5  ;;  %v545_v10 = vcvt.s32.f32 %v543_v6 }
 0x1c2   : > { %1316 = vrcp.f32 %v614_v23  ;;  %1223 = vmatpush3.bf16.msra.mxu0 %v1303_v57  ;;  %v1313_v57 = vld [vmem:[%s1594_s7 + $0x10] sm:$0xff]  }
 0x1c3   : > { %561 = vmin.xlane.f32.xlu1 %v560_v3  ;;  %547 = vmin.xlane.f32.xlu0 %v546_v4  ;;  %1318 = vrcp.f32 %v613_v26 }
 0x1c4   : > { %1224 = vmatprep.subr.bf16.mxu0 %v1359_v53 }
 0x1c6   : > { %1225 = vmatpush3.bf16.msra.mxu0 %v1304_v58  ;;  %v1314_v58 = vld [vmem:[%s1594_s7 + $0x8] sm:$0xff]  }
 0x1c7   : > { %1226 = vmatprep.subr.bf16.mxu0 %v1359_v53 }
 0x1ca   : > { %1227 = vmatpush3.bf16.msra.mxu0 %v1305_v59  ;;  %v1315_v59 = vld [vmem:[%s1594_s7] sm:$0xff]  }
 0x1cb   : > { %1228 = vmatprep.subr.bf16.mxu0 %v1359_v53 }
 0x1ce   : > { %1229 = vmatpush3.bf16.msra.mxu0 %v1306_v60 }
 0x1cf   : > { %v1465_v38 = vpop.eup %1316  ;;  %1234 = vmatprep.subr.bf16.mxu0 %v1359_v53 }
 0x1d0   : > { %v1467_v39 = vpop.eup %1318 }
 0x24c   : > { %v562_v7 = vpop.xlane.xlu1 %561  ;;  %v548_v8 = vpop.xlane.xlu0 %547 }
 0x24d   : > { %vm563_vm4 = vcmp.eq.f32.partialorder %v560_v3, %v562_v7  ;;  %vm549_vm5 = vcmp.eq.f32.partialorder %v546_v4, %v548_v8  ;;  %v568_v13 = vcvt.f32.s32 %v562_v7  ;;  %v554_v14 = vcvt.f32.s32 %v548_v8 }
 0x24e   : > { %v564_v11 = vsel %vm563_vm4, %v559_v9, inf  ;;  %v550_v12 = vsel %vm549_vm5, %v545_v10, inf  ;;  %vm828_vm4 = vcmask 64512  }
 0x24f   : > { %565 = vmin.xlane.f32.xlu1 %v564_v11  ;;  %551 = vmin.xlane.f32.xlu0 %v550_v12  ;;  %v569_v19 = vshll.u32 %v568_v13, 16  ;;  %v555_v20 = vshll.u32 %v554_v14, 16 }
 0x2d8   : > { %v566_v17 = vpop.xlane.xlu1 %565  ;;  %v552_v18 = vpop.xlane.xlu0 %551 }
 0x2d9   : > { %v567_v21 = vcvt.f32.s32 %v566_v17  ;;  %v553_v22 = vcvt.f32.s32 %v552_v18  ;;  %v604_v17 = vand.u32 127, %v1449_v61  ;;  %v603_v18 = vand.u32 127, %v1451_v62 }
 0x2db   : > { %v1457_v24 = vadd.s32 %v569_v19, %v567_v21  ;;  %v1459_v25 = vadd.s32 %v555_v20, %v553_v22  ;;  %vm1504_vm11 = vcmp.eq.s32.totalorder %v1445_v34, %v604_v17  ;;  %vm651_vm12 = vcmp.eq.s32.totalorder %v1445_v34, %v603_v18 }
 0x2dd   : > { %v620_v27 = vand.u32 4294967168, %v1457_v24  ;;  %v619_v28 = vand.u32 4294967168, %v1459_v25  ;;  %vm572_vm6 = vcmp.eq.s32.totalorder %v542_v63, %v1457_v24  ;;  %vm571_vm7 = vcmp.eq.s32.totalorder %v541_v0, %v1459_v25 }
 0x2de   : > { %v574_v31 = vsel %vm572_vm6, 2147483647, %v542_v63  ;;  %v573_v32 = vsel %vm571_vm7, 2147483647, %v541_v0  ;;  %v606_v19 = vand.u32 127, %v1457_v24  ;;  %v605_v20 = vand.u32 127, %v1459_v25 }
 0x2df   : > { %v624_v29 = vadd.f32 1e-08, %v620_v27  ;;  %v623_v30 = vadd.f32 1e-08, %v619_v28  ;;  %v590_v33 = vshra.s32 %v574_v31, 16  ;;  %v576_v35 = vshra.s32 %v573_v32, 16 }
 0x2e0   : > { %v589_v44 = vand.u32 65535, %v574_v31  ;;  %v575_v45 = vand.u32 65535, %v573_v32  ;;  %vm656_vm13 = vcmp.eq.s32.totalorder %v1445_v34, %v606_v19  ;;  %vm655_vm14 = vcmp.eq.s32.totalorder %v1445_v34, %v605_v20 }
 0x2e1   : > { %1320 = vrcp.f32 %v624_v29  ;;  %v592_v36 = vcvt.s32.f32 %v590_v33  ;;  %v578_v37 = vcvt.s32.f32 %v576_v35  ;;  %v773_v33 = vld [vmem:[%s1592_s5] sm:$0x3] }
 0x2e2   : > { %1322 = vrcp.f32 %v623_v30  ;;  %v591_v48 = vcvt.s32.f32 %v589_v44  ;;  %v577_v49 = vcvt.s32.f32 %v575_v45  ;;  %v1308_v45 = vld [vmem:[%s1594_s7 + $0x38] sm:$0xff]  }
 0x2e3   : > { %593 = vmin.xlane.f32.xlu1 %v592_v36  ;;  %579 = vmin.xlane.f32.xlu0 %v578_v37 }
 0x2ee   : > { %v1469_v40 = vpop.eup %1320 }
 0x2ef   : > { %v1471_v41 = vpop.eup %1322  ;;  %v640_v42 = vadd.f32 %v1469_v40, %v1465_v38 }
 0x2f0   : > { %v639_v43 = vadd.f32 %v1471_v41, %v1467_v39 }
 0x36c   : > { %v594_v46 = vpop.xlane.xlu1 %593  ;;  %v580_v47 = vpop.xlane.xlu0 %579 }
 0x36d   : > { %vm595_vm8 = vcmp.eq.f32.partialorder %v592_v36, %v594_v46  ;;  %vm581_vm9 = vcmp.eq.f32.partialorder %v578_v37, %v580_v47  ;;  %v600_v63 = vcvt.f32.s32 %v594_v46  ;;  %v586_v0 = vcvt.f32.s32 %v580_v47 }
 0x36e   : > { %v596_v50 = vsel %vm595_vm8, %v591_v48, inf  ;;  %v582_v51 = vsel %vm581_vm9, %v577_v49, inf  ;;  %v1309_v48 = vld [vmem:[%s1594_s7 + $0x30] sm:$0xff]   ;;  %v1310_v49 = vld [vmem:[%s1594_s7 + $0x28] sm:$0xff]  }
 0x36f   : > { %597 = vmin.xlane.f32.xlu1 %v596_v50  ;;  %583 = vmin.xlane.f32.xlu0 %v582_v51  ;;  %v601_v3 = vshll.u32 %v600_v63, 16  ;;  %v587_v4 = vshll.u32 %v586_v0, 16  ;;  %v1311_v50 = vld [vmem:[%s1594_s7 + $0x20] sm:$0xff]   ;;  %v1312_v51 = vld [vmem:[%s1594_s7 + $0x18] sm:$0xff]  }
 0x370   : > { %v1167_v0 = vld [vmem:[%s1593_s6] ss:$0 sm:$0xff] }
 0x3f8   : > { %v598_v1 = vpop.xlane.xlu1 %597  ;;  %v584_v2 = vpop.xlane.xlu0 %583 }
 0x3f9   : > { %v599_v5 = vcvt.f32.s32 %v598_v1  ;;  %v585_v6 = vcvt.f32.s32 %v584_v2 }
 0x3fb   : > { %v602_v7 = vadd.s32 %v601_v3, %v599_v5  ;;  %v588_v8 = vadd.s32 %v587_v4, %v585_v6 }
 0x3fd   : > { %v630_v9 = vand.u32 4294967168, %v602_v7  ;;  %v629_v10 = vand.u32 4294967168, %v588_v8  ;;  %v608_v22 = vand.u32 127, %v602_v7  ;;  %v607_v27 = vand.u32 127, %v588_v8 }
 0x3ff   : > { %v634_v11 = vadd.f32 1e-08, %v630_v9  ;;  %v633_v12 = vadd.f32 1e-08, %v629_v10  ;;  %vm660_vm0 = vcmp.eq.s32.totalorder %v1445_v34, %v608_v22  ;;  %vm659_vm1 = vcmp.eq.s32.totalorder %v1445_v34, %v607_v27  ;;  %v770_v34 = vld [vmem:[%s1591_s4] sm:$0xf] }
 0x400   : > { %v1168_v9 = vld [vmem:[%s1595_s8] ss:$0 sm:$0xff] }
 0x401   : > { %1324 = vrcp.f32 %v634_v11 }
 0x402   : > { %1326 = vrcp.f32 %v633_v12 }
 0x40e   : > { %v1325_v13 = vpop.eup %1324 }
 0x40f   : > { %v1327_v14 = vpop.eup %1326  ;;  %v642_v15 = vadd.f32 %v1325_v13, %v640_v42 }
 0x410   : > { %v641_v16 = vadd.f32 %v1327_v14, %v639_v43 }
 0x411   : > { %1328 = vrcp.f32 %v642_v15 }
 0x412   : > { %1330 = vrcp.f32 %v641_v16 }
 0x41e   : > { %v1329_v21 = vpop.eup %1328 }
 0x41f   : > { %v1331_v23 = vpop.eup %1330  ;;  %v646_v28 = vmul.f32 %v1329_v21, %v1465_v38  ;;  %v648_v29 = vmul.f32 %v1329_v21, %v1469_v40  ;;  %v650_v24 = vmul.f32 %v1329_v21, %v1325_v13  ;;  %v1307_v40 = vld [vmem:[%s428_s13] sm:$0xff]  }
 0x420   : > { %v644_v61 = vmul.f32 %v1331_v23, %v1467_v39  ;;  %v647_v62 = vmul.f32 %v1331_v23, %v1471_v41  ;;  %v649_v30 = vmul.f32 %v1331_v23, %v1327_v14  ;;  %v785_v39 = vsel %vm783_vm15, %v773_v33, 0 }
 0x421   : > { %v654_v25 = vsel %vm1504_vm11, %v646_v28, 0.0  ;;  %v834_v41 = vsel %vm832_vm3, %v770_v34, 0 }
 0x422   : > { %v653_v31 = vsel %vm651_vm12, %v644_v61, 0.0  ;;  %v658_v32 = vsel %vm656_vm13, %v648_v29, %v654_v25  ;;  %1241 = vmatpush3.bf16.msra.mxu1 %v834_v41 }
 0x423   : > { %v657_v35 = vsel %vm655_vm14, %v647_v62, %v653_v31  ;;  %v662_v36 = vsel %vm660_vm0, %v650_v24, %v658_v32  ;;  %1246 = vmatprep.subr.bf16.mxu1 %v1359_v53 }
 0x424   : > { %v661_v37 = vsel %vm659_vm1, %v649_v30, %v657_v35 }
 0x425   : > { %v679_v38 = vpack.c.bf16 %v662_v36, %v661_v37 }
 0x427   : > { %1231 = vmatmul.mubr.bf16.vlgmr.msra.gmra.mxu0 %v679_v38 }
 0x428   : > { %1235 = vmatpush3.bf16.msra.mxu0 %v785_v39  ;;  %1236 = vmatprep.mubr.msk.bf16.mxu0 %vm1360_vm10, %v1359_v53 }
 0x42f   : > { %1237 = vmatmul.mubr.msk.bf16.vlgmr.msra.gmra.mxu0 %vm779_vm2, %v1307_v40 }
 0x4e7   : > { %v762_v42 = vpop.f32.mrf.mxu0 }
 0x4e9   : > { %v1232_v43 = vpop.f32.mrf.mxu0 }
 0x4eb   : > { %v765_v44 = vpop.f32.mrf.mxu0 }
 0x4ec   : > { %v769_v46 = vpack.c.bf16 %v765_v44, %v762_v42 }
 0x4ed   : > { %v1233_v47 = vpop.f32.mrf.mxu0 }
 0x4ee   : > { %1243 = vmatmul.mubr.msk.bf16.vlgmr.msra.gmra.mxu1 %vm828_vm4, %v769_v46 }
 0x4ef   : > { %1247 = vmatpush3.bf16.msra.mxu1 %v1308_v45  ;;  %1262 = vmatprep.mubr.msk.bf16.mxu1 %vm1360_vm10, %v1359_v53  ;;  %v821_v52 = vpop.f32.mrf.mxu0 }
 0x4f0   : > { %1248 = vmatprep.subr.bf16.mxu1 %v1359_v53 }
 0x4f1   : > { %v1238_v54 = vpop.f32.mrf.mxu0 }
 0x4f3   : > { %1249 = vmatpush3.bf16.msra.mxu1 %v1309_v48  ;;  %v824_v55 = vpop.f32.mrf.mxu0 }
 0x4f4   : > { %1250 = vmatprep.subr.bf16.mxu1 %v1359_v53 }
 0x4f5   : > { %v1239_v56 = vpop.f32.mrf.mxu0 }
 0x4f7   : > { %1251 = vmatpush3.bf16.msra.mxu1 %v1310_v49 }
 0x4f8   : > { %1252 = vmatprep.subr.bf16.mxu1 %v1359_v53 }
 0x4fb   : > { %1253 = vmatpush3.bf16.msra.mxu1 %v1311_v50 }
 0x4fc   : > { %1254 = vmatprep.subr.bf16.mxu1 %v1359_v53 }
 0x4ff   : > { %1255 = vmatpush3.bf16.msra.mxu1 %v1312_v51 }
 0x500   : > { %1256 = vmatprep.subr.bf16.mxu1 %v1359_v53 }
 0x503   : > { %1257 = vmatpush3.bf16.msra.mxu1 %v1313_v57 }
 0x504   : > { %1258 = vmatprep.subr.bf16.mxu1 %v1359_v53 }
 0x507   : > { %1259 = vmatpush3.bf16.msra.mxu1 %v1314_v58 }
 0x508   : > { %1260 = vmatprep.subr.bf16.mxu1 %v1359_v53 }
 0x50b   : > { %1261 = vmatpush3.bf16.msra.mxu1 %v1315_v59 }
 0x5ae   : > { %v870_v60 = vpop.f32.mrf.mxu1 }
 0x5af   : > { %v871_v63 = vadd.f32 %v870_v60, %v821_v52 }
 0x5b0   : > { %v1244_v1 = vpop.f32.mrf.mxu1 }
 0x5b1   : > { %v884_v3 = vadd.f32 %v1167_v0, %v871_v63 }
 0x5b2   : > { %v873_v2 = vpop.f32.mrf.mxu1 }
 0x5b3   : > { %v874_v4 = vadd.f32 %v873_v2, %v824_v55  ;;  %v886_v7 = vmax.f32 %v884_v3, 0.0 }
 0x5b4   : > { %v1245_v5 = vpop.f32.mrf.mxu1 }
 0x5b5   : > { %v885_v6 = vadd.f32 %v1167_v0, %v874_v4 }
 0x5b7   : > { %v887_v53 = vmax.f32 %v885_v6, 0.0 }
 0x5b9   : > { %v888_v8 = vpack.c.bf16 %v887_v53, %v886_v7 }
 0x5bb   : > { %1263 = vmatmul.mubr.bf16.vlgmr.msra.gmra.mxu1 %v888_v8 }
 0x67b   : > { %v994_v10 = vpop.f32.mrf.mxu1 }
 0x67c   : > { %v995_v12 = vadd.f32 %v1168_v9, %v994_v10 }
 0x67d   : > { %v1264_v11 = vpop.f32.mrf.mxu1 }
 0x67e   : > { %v1001_v16 = vmax.f32 %v995_v12, 0.0 }
 0x67f   : > { %v997_v13 = vpop.f32.mrf.mxu1 }
 0x680   : > { %v998_v14 = vadd.f32 %v1168_v9, %v997_v13 }
 0x681   : > { %v1265_v15 = vpop.f32.mrf.mxu1 }
 0x682   : > { %v1002_v17 = vmax.f32 %v998_v14, 0.0 }
 0x684   : > { %v1190_v18 = vpack.c.bf16 %v1002_v17, %v1001_v16 }
 0x686   : > { %1191 = vst [vmem:[%s443_s22] sm:$0xff] %v1190_v18  }
 0x687 PF: > { %s19_s11 = sadd.s32 1, %s1354_s11   ;;  %s1599_s30 = smov %s1350_s10 }
 0x688   : > { %p16_p5 = scmp.ge.s32.totalorder %s19_s11, 4   ;;  %s1600_s10 = smov %s1602_s12 }
 0x68a   :  { %18 = sbr.rel (!%p16_p5) target bundleno = 2 (0x2), region = 95 }

</bundles_post_ra>
